<compile_context>
chip_gen: v7x
topology: tpu7x:2x2x1
jax: 0.10.0
libtpu: 0.0.40
codegen_flags: <defaults>
</compile_context>

<pallas_src>
import jax
import jax.numpy as jnp
from jax.experimental import pallas as pl
from jax.experimental.pallas import tpu as pltpu


def _dup_kernel(x_ref, a_ref, b_ref):
    v = x_ref[...]
    a_ref[...] = v
    b_ref[...] = v


def duplicate(x, *, target_tile_bytes=2 * 1024 * 1024):
    """Pallas implementation of Duplicate.forward: returns [copy(x), copy(x)]."""
    orig_shape = x.shape
    dtype = x.dtype
    n = x.size
    itemsize = jnp.dtype(dtype).itemsize

    # Pick the widest lane-dense last dim (multiple of 128) that divides N.
    lane = None
    for cand in (4096, 2048, 1024, 512, 256, 128):
        if n % cand == 0:
            lane = cand
            break

    if lane is None:
        # TODO(synk): inputs whose total element count is not 128-divisible fall
        # back to one whole-array block (fine for small inputs only).
        a, b = pl.pallas_call(
            _dup_kernel,
            out_shape=(jax.ShapeDtypeStruct(orig_shape, dtype),) * 2,
        )(x)
        return [a, b]

    rows = n // lane
    x2 = x.reshape(rows, lane)

    # VMEM budget: 2 (double-buffer) x 3 operands (1 in + 2 out) x tile bytes.
    # target_tile_bytes = 2 MiB  ->  ~12 MiB total, comfortably under the
    # 32 MiB scoped default on v7x and tiny on v5e/v6e's 128 MiB VMEM.
    max_rows = max(8, ((target_tile_bytes // (lane * itemsize)) // 8) * 8)
    t_rows = min(rows, max_rows)            # == rows (full extent) when small
    grid_rows = pl.cdiv(rows, t_rows)

    spec = pl.BlockSpec((t_rows, lane), lambda i: (i, 0))

    a, b = pl.pallas_call(
        _dup_kernel,
        out_shape=(jax.ShapeDtypeStruct((rows, lane), dtype),) * 2,
        grid=(grid_rows,),
        in_specs=[spec],
        out_specs=(spec, spec),
        compiler_params=pltpu.CompilerParams(
            dimension_semantics=("parallel",),
        ),
    )(x2)
    return [a.reshape(orig_shape), b.reshape(orig_shape)]


def duplicate_reference(x):
    """Pure-JAX reference mirroring the torch module."""
    return [x, x]


if __name__ == "__main__":
    key = jax.random.PRNGKey(0)
    B, S, H = 2, 8, 32
    x = jax.random.normal(key, (B, S, H), dtype=jnp.float32)

    outs = duplicate(x)
    outs = jax.block_until_ready(outs)
    refs = duplicate_reference(x)

    assert isinstance(outs, list) and len(outs) == 2
    for o, r in zip(outs, refs):
        assert o.shape == r.shape
        assert o.dtype == r.dtype
        assert jnp.array_equal(o, r)

    print("KERNEL_OK")
</pallas_src>

<mosaic_0001>
module attributes {stable_mosaic.version = 11 : i64} {
  func.func @_dup_kernel(%arg0: i32, %arg1: memref<1x512xf32, #tpu.memory_space<vmem>>, %arg2: memref<1x512xf32, #tpu.memory_space<vmem>>, %arg3: memref<1x512xf32, #tpu.memory_space<vmem>>) attributes {dimension_semantics = [#tpu.dimension_semantics<parallel>], iteration_bounds = array<i64: 1>, scalar_prefetch = 0 : i64, scratch_operands = 0 : i64, tpu.core_type = #tpu.core_type<tc>, window_params = [{transform_indices = @transform_0, window_bounds = array<i64: 1, 512>}, {transform_indices = @transform_1, window_bounds = array<i64: 1, 512>}, {transform_indices = @transform_2, window_bounds = array<i64: 1, 512>}]} {
    %c0 = arith.constant 0 : index
    %c0_0 = arith.constant 0 : index
    %0 = vector.load %arg1[%c0, %c0_0] : memref<1x512xf32, #tpu.memory_space<vmem>>, vector<1x512xf32>
    %c0_1 = arith.constant 0 : index
    %c0_2 = arith.constant 0 : index
    %1 = vector.load %arg2[%c0_1, %c0_2] : memref<1x512xf32, #tpu.memory_space<vmem>>, vector<1x512xf32>
    tpu.vector_store %arg2[%c0_1, %c0_2], %0 {strides = array<i32>} : memref<1x512xf32, #tpu.memory_space<vmem>>, vector<1x512xf32>,
    %c0_3 = arith.constant 0 : index
    %c0_4 = arith.constant 0 : index
    %2 = vector.load %arg3[%c0_3, %c0_4] : memref<1x512xf32, #tpu.memory_space<vmem>>, vector<1x512xf32>
    tpu.vector_store %arg3[%c0_3, %c0_4], %0 {strides = array<i32>} : memref<1x512xf32, #tpu.memory_space<vmem>>, vector<1x512xf32>,
    return
  }
  func.func @transform_0(%arg0: i32) -> (i32, i32) {
    %c0_i32 = arith.constant 0 : i32
    %c0_i32_0 = arith.constant 0 : i32
    return %arg0, %c0_i32 : i32, i32
  }
  func.func @transform_1(%arg0: i32) -> (i32, i32) {
    %c0_i32 = arith.constant 0 : i32
    %c0_i32_0 = arith.constant 0 : i32
    return %arg0, %c0_i32 : i32, i32
  }
  func.func @transform_2(%arg0: i32) -> (i32, i32) {
    %c0_i32 = arith.constant 0 : i32
    %c0_i32_0 = arith.constant 0 : i32
    return %arg0, %c0_i32 : i32, i32
  }
}

</mosaic_0001>

<bundles_post_ra>
// kernel: tpu_custom_call.1
= control target key start
LH: loop header
LB: loop body
LE: loop exit
PB: predicated region body
PF: predicated region fallthrough
CT: control target
= control target key end

     0   :  { %8 = vsyncpa [#allocation3], 0  ;;  %s189_s0 = inlined_call_operand.hbm [shape: f32[1,512], index: 0, kind: input, shape index: {}]   ;;  %s190_s1 = inlined_call_operand.hbm [shape: f32[1,512], index: 1, kind: output, shape index: {0}]   ;;  %s191_s2 = inlined_call_operand.hbm [shape: f32[1,512], index: 2, kind: output, shape index: {1}]  }
   0x1   :  { %9 = vsyncpa [#allocation4], 0 }
   0x2   :  { %10 = vsyncpa [#allocation7], 0  ;;  %s135_s9 = smov [#allocation2]   ;;  %s63_s13 = scalar_lea.hbm %s189_s0, 64 }
   0x3   :  { %s17_s10 = sshll.u32 %s135_s9, 4  ;;  %p64_p0 = scmp.ne.s32.totalorder %s189_s0, %s63_s13  ;;  %s18_s10 = int_to_ptr.vmem [resolvable:$true] %s17_s10 }
   0x4   :  { %p67_p1 = scmp.lt.u32.totalorder %s63_s13, %s189_s0 }
   0x6   :  { %p69_p2 = pnand %p67_p1, %p64_p0 }
   0x8   :  { %72 = shalt.err (!%p69_p2)
}
   0x9   :  { %s73_s18 = scalar_lea.vmem %s18_s10, 64  ;;  %p78_p4 = scmp.lt.s32.totalorder %s18_s10, %s18_s10 }
   0xa   :  { %p74_p3 = scmp.ne.s32.totalorder %s18_s10, %s73_s18  ;;  %p79_p5 = scmp.lt.s32.totalorder %s73_s18, %s73_s18 }
   0xc   :  { %p80_p6 = por %p79_p5, %p78_p4 }
   0xe   :  { %p81_p7 = pnand %p80_p6, %p74_p3 }
  0x10   :  { %84 = shalt.err (!%p81_p7)
}
  0x11   :  { %20 = dma.hbm_to_vmem [thread:$0]  %s189_s0, 64, %s18_s10, [#allocation3]  }
  0x12   :  { %129 = dma.done.wait [#allocation3], 64  }
  0x13   :  { %130 = vsyncadd [#allocation3], 4294967232  ;;  %v25_v0 = vlaneseq  ;;  %s136_s21 = smov [#allocation5]   ;;  %s137_s23 = smov [#allocation6]   ;;  %v24_v1 = vld [vmem:[#allocation2] sm:$0xf] }
  0x14   :  { %s37_s22 = sshll.u32 %s136_s21, 4  ;;  %s47_s24 = sshll.u32 %s137_s23, 4  ;;  %s38_s22 = int_to_ptr.vmem [resolvable:$true] %s37_s22  ;;  %s48_s24 = int_to_ptr.vmem [resolvable:$true] %s47_s24 }
  0x15   :  { %vm27_vm0 = vcmp.lt.s32.totalorder %v25_v0, 512  ;;  %s85_s25 = scalar_lea.vmem %s38_s22, 64  ;;  %p90_p9 = scmp.lt.s32.totalorder %s38_s22, %s38_s22 }
  0x16   :  { %29 = vst.msk [vmem:[#allocation5] sm:$0xf] %vm27_vm0, %v24_v1  ;;  %30 = vst.msk [vmem:[#allocation6] sm:$0xf] %vm27_vm0, %v24_v1  ;;  %p86_p8 = scmp.ne.s32.totalorder %s38_s22, %s85_s25  ;;  %p91_p10 = scmp.lt.s32.totalorder %s85_s25, %s85_s25 }
  0x18   :  { %p92_p11 = por %p91_p10, %p90_p9 }
  0x1a   :  { %p93_p12 = pnand %p92_p11, %p86_p8 }
  0x1c   :  { %96 = shalt.err (!%p93_p12)
}
  0x1d   :  { %s97_s27 = scalar_lea.hbm %s190_s1, 64 }
  0x1e   :  { %p98_p13 = scmp.ne.s32.totalorder %s190_s1, %s97_s27  ;;  %p101_p0 = scmp.lt.u32.totalorder %s97_s27, %s190_s1 }
  0x20   :  { %p103_p1 = pnand %p101_p0, %p98_p13 }
  0x22   :  { %106 = shalt.err (!%p103_p1)
}
  0x23   :  { %40 = dma.vmem_to_hbm [thread:$0]  %s38_s22, 64, %s190_s1, [#allocation4]  }
  0x24   :  { %s107_s6 = scalar_lea.vmem %s48_s24, 64  ;;  %p112_p3 = scmp.lt.s32.totalorder %s48_s24, %s48_s24 }
  0x25   :  { %p108_p2 = scmp.ne.s32.totalorder %s48_s24, %s107_s6  ;;  %p113_p4 = scmp.lt.s32.totalorder %s107_s6, %s107_s6 }
  0x27   :  { %p114_p5 = por %p113_p4, %p112_p3 }
  0x29   :  { %p115_p6 = pnand %p114_p5, %p108_p2 }
  0x2b   :  { %118 = shalt.err (!%p115_p6)
}
  0x2c   :  { %s119_s9 = scalar_lea.hbm %s191_s2, 64 }
  0x2d   :  { %p120_p7 = scmp.ne.s32.totalorder %s191_s2, %s119_s9  ;;  %p123_p8 = scmp.lt.u32.totalorder %s119_s9, %s191_s2 }
  0x2f   :  { %p125_p9 = pnand %p123_p8, %p120_p7 }
  0x31   :  { %128 = shalt.err (!%p125_p9)
}
  0x32   :  { %50 = dma.vmem_to_hbm [thread:$0]  %s48_s24, 64, %s191_s2, [#allocation7]  }
  0x33   :  { %131 = dma.done.wait [#allocation4], 64  }
  0x34   :  { %132 = vsyncadd [#allocation4], 4294967232 }
  0x35   :  { %133 = dma.done.wait [#allocation7], 64  }
  0x36   :  { %134 = vsyncadd [#allocation7], 4294967232 }
  0x37   :  { %57 = vsyncpa [#allocation3], 1 }
  0x38   :  { %58 = vsyncpa [#allocation4], 1 }
  0x39   :  { %59 = vsyncpa [#allocation7], 1 }

</bundles_post_ra>
